<compile_context>
chip_gen: v6e
topology: v6e:2x2x1
jax: 0.10.0
libtpu: 0.0.40
codegen_flags: <defaults>
</compile_context>

<pallas_src>
from functools import partial

import jax
import jax.numpy as jnp
from jax.experimental import pallas as pl
from jax.experimental.pallas import tpu as pltpu

HIDDEN1 = 128   # first hidden width (already lane-aligned)
HIDDEN2 = 64    # second hidden width (padded to LANE inside the kernel)
LANE = 128      # lane-dense padded width for the second hidden layer


def _round_up(n, m):
    return (n + m - 1) // m * m


def _eegmlp_kernel(x_ref, w1_ref, c1_ref, w2_ref, c2_ref, w3_ref, b3_ref, o_ref):
    # Cast activations to bf16 in-kernel (hidden under the matmuls).
    x = x_ref[...].astype(jnp.bfloat16)

    # Layer 1: Linear (BN scale folded into w1, bias+BN offset in c1) + ReLU.
    h1 = jnp.dot(x, w1_ref[...], preferred_element_type=jnp.float32)
    h1 = jnp.maximum(h1 + c1_ref[...], 0.0)
    # Dropout(0.4): identity in eval mode.

    # Layer 2: Linear + ReLU (features zero-padded 64->128; padded lanes stay
    # exactly 0 because w2/c2 are zero there).
    h2 = jnp.dot(h1.astype(jnp.bfloat16), w2_ref[...],
                 preferred_element_type=jnp.float32)
    h2 = jnp.maximum(h2 + c2_ref[...], 0.0)
    # Dropout(0.4): identity in eval mode.

    # Output head: num_classes padded only to a multiple of 8 (narrow store,
    # DMA writeback is the binding resource, not the store slot).
    o = jnp.dot(h2.astype(jnp.bfloat16), w3_ref[...],
                preferred_element_type=jnp.float32)
    o_ref[...] = o + b3_ref[...]


def prepare_params(params):
    """One-time fold / pad / cast of weights into kernel-ready operands.

    Done outside the per-call path (call once, reuse across forward calls).
    """
    num_classes = params["w3"].shape[1]
    c_pad = _round_up(num_classes, 8)

    def fold_bn(gamma, beta, mean, var, bias, eps=1e-5):
        a = gamma / jnp.sqrt(var + eps)          # BN scale
        c = beta + (bias - mean) * a             # BN offset with Linear bias folded
        return a, c

    a1, c1 = fold_bn(params["bn1_gamma"], params["bn1_beta"],
                     params["bn1_mean"], params["bn1_var"], params["b1"])
    a2, c2 = fold_bn(params["bn2_gamma"], params["bn2_beta"],
                     params["bn2_mean"], params["bn2_var"], params["b2"])

    # Fold BN scales into the weights in f32, then cast to bf16.
    w1 = (params["w1"] * a1[None, :]).astype(jnp.bfloat16)                  # (F, 128)
    w2 = (jnp.zeros((HIDDEN1, LANE), jnp.float32)
          .at[:, :HIDDEN2].set(params["w2"] * a2[None, :])).astype(jnp.bfloat16)
    c2p = jnp.zeros((LANE,), jnp.float32).at[:HIDDEN2].set(c2)
    w3 = (jnp.zeros((LANE, c_pad), jnp.float32)
          .at[:HIDDEN2, :num_classes].set(params["w3"])).astype(jnp.bfloat16)
    b3 = jnp.zeros((c_pad,), jnp.float32).at[:num_classes].set(params["b3"])

    prepped = dict(w1=w1, c1=c1[None, :], w2=w2, c2=c2p[None, :],
                   w3=w3, b3=b3[None, :])
    return jax.tree.map(jax.block_until_ready, prepped), num_classes


def _choose_tile_b(B, F, c_pad):
    """Batch tile: big (fewer per-step overheads), VMEM-budgeted, >=2 steps."""
    if B <= 16:
        return B                                   # single full-array block
    row_bytes = 2 * 4 * (F + c_pad)                # double-buffered f32 x + out rows
    cap = min(2048, max(8, (4 << 20) // row_bytes))
    cap = max(8, cap // 8 * 8)
    n_steps = max(2, pl.cdiv(B, cap))              # >=2 steps -> v7x megacore sharding
    return min(cap, _round_up(pl.cdiv(B, n_steps), 8))


@partial(jax.jit, static_argnums=(2,))
def eegmlp_forward(x, prepped, num_classes):
    """x: [B, input_dim] float32. prepped: output of prepare_params()[0]."""
    B, F = x.shape
    c_pad = prepped["b3"].shape[1]
    tile_b = _choose_tile_b(B, F, c_pad)
    grid = (pl.cdiv(B, tile_b),)

    def resident(arr):
        # Weight / affine operand: same block every grid step (VMEM-resident).
        return pl.BlockSpec(arr.shape, lambda i: (0, 0))

    in_specs = [
        pl.BlockSpec((tile_b, F), lambda i: (i, 0)),   # x tile (pipelined)
        resident(prepped["w1"]), resident(prepped["c1"]),
        resident(prepped["w2"]), resident(prepped["c2"]),
        resident(prepped["w3"]), resident(prepped["b3"]),
    ]
    out_spec = pl.BlockSpec((tile_b, c_pad), lambda i: (i, 0))

    flops = int(2 * B * (F * HIDDEN1 + HIDDEN1 * LANE + LANE * c_pad))
    bytes_accessed = int(
        B * F * 4                                          # f32 activations in
        + B * c_pad * 4                                    # narrow f32 output
        + (prepped["w1"].size + prepped["w2"].size + prepped["w3"].size) * 2
        + (prepped["c1"].size + prepped["c2"].size + prepped["b3"].size) * 4)

    out = pl.pallas_call(
        _eegmlp_kernel,
        out_shape=jax.ShapeDtypeStruct((B, c_pad), jnp.float32),
        grid=grid,
        in_specs=in_specs,
        out_specs=out_spec,
        compiler_params=pltpu.CompilerParams(
            dimension_semantics=("parallel",)),
        cost_estimate=pl.CostEstimate(
            flops=flops, transcendentals=0, bytes_accessed=bytes_accessed),
    )(x, prepped["w1"], prepped["c1"], prepped["w2"], prepped["c2"],
      prepped["w3"], prepped["b3"])

    return out[:, :num_classes]


def init_params(key, input_dim, num_classes):
    """Deterministic synthetic parameters mimicking PyTorch default init."""
    ks = jax.random.split(key, 12)

    def linear(kw, kb, fan_in, fan_out):
        bound = 1.0 / jnp.sqrt(float(fan_in))
        # Stored pre-transposed: [fan_in, fan_out] so the kernel does x @ W.
        w = jax.random.uniform(kw, (fan_in, fan_out), jnp.float32, -bound, bound)
        b = jax.random.uniform(kb, (fan_out,), jnp.float32, -bound, bound)
        return w, b

    w1, b1 = linear(ks[0], ks[1], input_dim, HIDDEN1)
    w2, b2 = linear(ks[2], ks[3], HIDDEN1, HIDDEN2)
    w3, b3 = linear(ks[4], ks[5], HIDDEN2, num_classes)

    def bn(kg, kb, km, n):
        gamma = 1.0 + 0.1 * jax.random.normal(kg, (n,), jnp.float32)
        beta = 0.1 * jax.random.normal(kb, (n,), jnp.float32)
        mean = 0.05 * jax.random.normal(km, (n,), jnp.float32)
        var = jnp.ones((n,), jnp.float32) * 0.9
        return gamma, beta, mean, var

    bn1_gamma, bn1_beta, bn1_mean, bn1_var = bn(ks[6], ks[7], ks[8], HIDDEN1)
    bn2_gamma, bn2_beta, bn2_mean, bn2_var = bn(ks[9], ks[10], ks[11], HIDDEN2)

    return dict(
        w1=w1, b1=b1, w2=w2, b2=b2, w3=w3, b3=b3,
        bn1_gamma=bn1_gamma, bn1_beta=bn1_beta, bn1_mean=bn1_mean, bn1_var=bn1_var,
        bn2_gamma=bn2_gamma, bn2_beta=bn2_beta, bn2_mean=bn2_mean, bn2_var=bn2_var,
    )


def reference_forward_f32(x, params):
    """Exact PyTorch eval-mode forward in f32 (loose comparison target)."""
    def bn(h, gamma, beta, mean, var, eps=1e-5):
        return (h - mean) / jnp.sqrt(var + eps) * gamma + beta

    h = x @ params["w1"] + params["b1"]
    h = jnp.maximum(bn(h, params["bn1_gamma"], params["bn1_beta"],
                       params["bn1_mean"], params["bn1_var"]), 0.0)
    h = h @ params["w2"] + params["b2"]
    h = jnp.maximum(bn(h, params["bn2_gamma"], params["bn2_beta"],
                       params["bn2_mean"], params["bn2_var"]), 0.0)
    return h @ params["w3"] + params["b3"]


def reference_forward_prepped(x, prepped, num_classes):
    """Pure-JAX mirror of the kernel's mixed precision (tight comparison)."""
    def mm(a, b):
        return jnp.dot(a.astype(jnp.bfloat16), b, preferred_element_type=jnp.float32)

    h = jnp.maximum(mm(x, prepped["w1"]) + prepped["c1"], 0.0)
    h = jnp.maximum(mm(h, prepped["w2"]) + prepped["c2"], 0.0)
    return (mm(h, prepped["w3"]) + prepped["b3"])[:, :num_classes]


if __name__ == "__main__":
    key = jax.random.PRNGKey(0)
    k_x, k_p = jax.random.split(key)

    batch, input_dim, num_classes = 8, 32, 4
    x = jax.random.normal(k_x, (batch, input_dim), jnp.float32)
    params = init_params(k_p, input_dim, num_classes)

    # One-time weight preparation (outside the per-call path).
    prepped, n_cls = prepare_params(params)

    out = jax.block_until_ready(eegmlp_forward(x, prepped, n_cls))
    assert out.shape == (batch, num_classes)

    # Tight check: same operands / mixed precision as the kernel.
    ref_mixed = reference_forward_prepped(x, prepped, n_cls)
    assert jnp.allclose(out, ref_mixed, atol=1e-2, rtol=1e-2), \
        "mismatch vs mixed-precision reference"

    # Loose check: exact f32 PyTorch eval-mode semantics.
    ref_f32 = reference_forward_f32(x, params)
    assert jnp.allclose(out, ref_f32, atol=5e-2, rtol=5e-2), \
        "mismatch vs f32 reference"

    print("KERNEL_OK")
</pallas_src>

<mosaic_0001>
module attributes {stable_mosaic.version = 11 : i64} {
  func.func @_eegmlp_kernel(%arg0: i32, %arg1: memref<8x32xf32, #tpu.memory_space<vmem>>, %arg2: memref<32x128xbf16, #tpu.memory_space<vmem>>, %arg3: memref<1x128xf32, #tpu.memory_space<vmem>>, %arg4: memref<128x128xbf16, #tpu.memory_space<vmem>>, %arg5: memref<1x128xf32, #tpu.memory_space<vmem>>, %arg6: memref<128x8xbf16, #tpu.memory_space<vmem>>, %arg7: memref<1x8xf32, #tpu.memory_space<vmem>>, %arg8: memref<8x8xf32, #tpu.memory_space<vmem>>) attributes {dimension_semantics = [#tpu.dimension_semantics<parallel>], iteration_bounds = array<i64: 1>, scalar_prefetch = 0 : i64, scratch_operands = 0 : i64, tpu.core_type = #tpu.core_type<tc>, window_params = [{transform_indices = @transform_0, window_bounds = array<i64: 8, 32>}, {pipeline_mode = #tpu.pipeline_mode<synchronous>, transform_indices = @transform_1, window_bounds = array<i64: 32, 128>}, {pipeline_mode = #tpu.pipeline_mode<synchronous>, transform_indices = @transform_2, window_bounds = array<i64: 1, 128>}, {pipeline_mode = #tpu.pipeline_mode<synchronous>, transform_indices = @transform_3, window_bounds = array<i64: 128, 128>}, {pipeline_mode = #tpu.pipeline_mode<synchronous>, transform_indices = @transform_4, window_bounds = array<i64: 1, 128>}, {pipeline_mode = #tpu.pipeline_mode<synchronous>, transform_indices = @transform_5, window_bounds = array<i64: 128, 8>}, {pipeline_mode = #tpu.pipeline_mode<synchronous>, transform_indices = @transform_6, window_bounds = array<i64: 1, 8>}, {transform_indices = @transform_7, window_bounds = array<i64: 8, 8>}]} {
    %c0 = arith.constant 0 : index
    %c0_0 = arith.constant 0 : index
    %0 = vector.load %arg1[%c0, %c0_0] : memref<8x32xf32, #tpu.memory_space<vmem>>, vector<8x32xf32>
    %1 = arith.truncf %0 : vector<8x32xf32> to vector<8x32xbf16>
    %c0_1 = arith.constant 0 : index
    %c0_2 = arith.constant 0 : index
    %2 = vector.load %arg2[%c0_1, %c0_2] : memref<32x128xbf16, #tpu.memory_space<vmem>>, vector<32x128xbf16>
    %cst = arith.constant dense<0.000000e+00> : vector<8x128xf32>
    %3 = tpu.matmul %1, %2, %cst {dimension_numbers = #tpu.dot_dimension_numbers<[1], [0], [0], [1], [0, 0, 1, 1], [], []>} : vector<8x32xbf16>, vector<32x128xbf16>, vector<8x128xf32> -> vector<8x128xf32>
    %c0_3 = arith.constant 0 : index
    %c0_4 = arith.constant 0 : index
    %4 = vector.load %arg3[%c0_3, %c0_4] : memref<1x128xf32, #tpu.memory_space<vmem>>, vector<1x128xf32>
    %5 = vector.broadcast %4 : vector<1x128xf32> to vector<8x128xf32>
    %6 = arith.addf %3, %5 : vector<8x128xf32>
    %cst_5 = arith.constant 0.000000e+00 : f32
    %7 = vector.broadcast %cst_5 : f32 to vector<8x128xf32>
    %8 = arith.maximumf %6, %7 : vector<8x128xf32>
    %9 = arith.truncf %8 : vector<8x128xf32> to vector<8x128xbf16>
    %c0_6 = arith.constant 0 : index
    %c0_7 = arith.constant 0 : index
    %10 = vector.load %arg4[%c0_6, %c0_7] : memref<128x128xbf16, #tpu.memory_space<vmem>>, vector<128x128xbf16>
    %cst_8 = arith.constant dense<0.000000e+00> : vector<8x128xf32>
    %11 = tpu.matmul %9, %10, %cst_8 {dimension_numbers = #tpu.dot_dimension_numbers<[1], [0], [0], [1], [0, 0, 1, 1], [], []>} : vector<8x128xbf16>, vector<128x128xbf16>, vector<8x128xf32> -> vector<8x128xf32>
    %c0_9 = arith.constant 0 : index
    %c0_10 = arith.constant 0 : index
    %12 = vector.load %arg5[%c0_9, %c0_10] : memref<1x128xf32, #tpu.memory_space<vmem>>, vector<1x128xf32>
    %13 = vector.broadcast %12 : vector<1x128xf32> to vector<8x128xf32>
    %14 = arith.addf %11, %13 : vector<8x128xf32>
    %cst_11 = arith.constant 0.000000e+00 : f32
    %15 = vector.broadcast %cst_11 : f32 to vector<8x128xf32>
    %16 = arith.maximumf %14, %15 : vector<8x128xf32>
    %17 = arith.truncf %16 : vector<8x128xf32> to vector<8x128xbf16>
    %c0_12 = arith.constant 0 : index
    %c0_13 = arith.constant 0 : index
    %18 = vector.load %arg6[%c0_12, %c0_13] : memref<128x8xbf16, #tpu.memory_space<vmem>>, vector<128x8xbf16>
    %cst_14 = arith.constant dense<0.000000e+00> : vector<8x8xf32>
    %19 = tpu.matmul %17, %18, %cst_14 {dimension_numbers = #tpu.dot_dimension_numbers<[1], [0], [0], [1], [0, 0, 1, 1], [], []>} : vector<8x128xbf16>, vector<128x8xbf16>, vector<8x8xf32> -> vector<8x8xf32>
    %c0_15 = arith.constant 0 : index
    %c0_16 = arith.constant 0 : index
    %20 = vector.load %arg7[%c0_15, %c0_16] : memref<1x8xf32, #tpu.memory_space<vmem>>, vector<1x8xf32>
    %21 = vector.broadcast %20 : vector<1x8xf32> to vector<8x8xf32>
    %22 = arith.addf %19, %21 : vector<8x8xf32>
    %c0_17 = arith.constant 0 : index
    %c0_18 = arith.constant 0 : index
    %23 = vector.load %arg8[%c0_17, %c0_18] : memref<8x8xf32, #tpu.memory_space<vmem>>, vector<8x8xf32>
    tpu.vector_store %arg8[%c0_17, %c0_18], %22 {strides = array<i32>} : memref<8x8xf32, #tpu.memory_space<vmem>>, vector<8x8xf32>,
    return
  }
  func.func @transform_0(%arg0: i32) -> (i32, i32) {
    %c0_i32 = arith.constant 0 : i32
    %c0_i32_0 = arith.constant 0 : i32
    return %arg0, %c0_i32 : i32, i32
  }
  func.func @transform_1(%arg0: i32) -> (i32, i32) {
    %c0_i32 = arith.constant 0 : i32
    %c0_i32_0 = arith.constant 0 : i32
    %c0_i32_1 = arith.constant 0 : i32
    return %c0_i32, %c0_i32_0 : i32, i32
  }
  func.func @transform_2(%arg0: i32) -> (i32, i32) {
    %c0_i32 = arith.constant 0 : i32
    %c0_i32_0 = arith.constant 0 : i32
    %c0_i32_1 = arith.constant 0 : i32
    return %c0_i32, %c0_i32_0 : i32, i32
  }
  func.func @transform_3(%arg0: i32) -> (i32, i32) {
    %c0_i32 = arith.constant 0 : i32
    %c0_i32_0 = arith.constant 0 : i32
    %c0_i32_1 = arith.constant 0 : i32
    return %c0_i32, %c0_i32_0 : i32, i32
  }
  func.func @transform_4(%arg0: i32) -> (i32, i32) {
    %c0_i32 = arith.constant 0 : i32
    %c0_i32_0 = arith.constant 0 : i32
    %c0_i32_1 = arith.constant 0 : i32
    return %c0_i32, %c0_i32_0 : i32, i32
  }
  func.func @transform_5(%arg0: i32) -> (i32, i32) {
    %c0_i32 = arith.constant 0 : i32
    %c0_i32_0 = arith.constant 0 : i32
    %c0_i32_1 = arith.constant 0 : i32
    return %c0_i32, %c0_i32_0 : i32, i32
  }
  func.func @transform_6(%arg0: i32) -> (i32, i32) {
    %c0_i32 = arith.constant 0 : i32
    %c0_i32_0 = arith.constant 0 : i32
    %c0_i32_1 = arith.constant 0 : i32
    return %c0_i32, %c0_i32_0 : i32, i32
  }
  func.func @transform_7(%arg0: i32) -> (i32, i32) {
    %c0_i32 = arith.constant 0 : i32
    %c0_i32_0 = arith.constant 0 : i32
    return %arg0, %c0_i32 : i32, i32
  }
}

</mosaic_0001>

<bundles_post_ra>
// kernel: eegmlp_forward.1
= control target key start
LH: loop header
LB: loop body
LE: loop exit
PB: predicated region body
PF: predicated region fallthrough
CT: control target
= control target key end

     0   :  { %12 = vsyncpa [#allocation3], 0  ;;  %s651_s0 = inlined_call_operand.vmem [shape: f32[8,32], index: 0, kind: input, shape index: {}]   ;;  %s652_s1 = inlined_call_operand.hbm [shape: bf16[32,128], index: 1, kind: input, shape index: {}]   ;;  %s653_s2 = inlined_call_operand.vmem [shape: f32[1,128], index: 2, kind: input, shape index: {}]   ;;  %s654_s3 = inlined_call_operand.vmem [shape: bf16[128,128], index: 3, kind: input, shape index: {}]   ;;  %s655_s4 = inlined_call_operand.vmem [shape: f32[1,128], index: 4, kind: input, shape index: {}]   ;;  %s656_s5 = inlined_call_operand.vmem [shape: bf16[128,8], index: 5, kind: input, shape index: {}]   ;;  %s657_s6 = inlined_call_operand.hbm [shape: f32[1,8], index: 6, kind: input, shape index: {}]   ;;  %s658_s7 = inlined_call_operand.vmem [shape: f32[8,8], index: 7, kind: output, shape index: {}]  }
   0x1   :  { %13 = vsyncpa [#allocation5], 0  ;;  %s515_s24 = smov [#allocation2]  }
   0x2   :  { %s21_s25 = sshll.u32 %s515_s24, 4  ;;  %s22_s25 = int_to_ptr.vmem [resolvable:$true] %s21_s25 }
   0x3   :  { %s479_s26 = scalar_lea.vmem %s22_s25, 256  ;;  %p484_p1 = scmp.lt.s32.totalorder %s22_s25, %s22_s25 }
   0x4   :  { %p480_p0 = scmp.ne.s32.totalorder %s22_s25, %s479_s26  ;;  %p485_p2 = scmp.lt.s32.totalorder %s479_s26, %s479_s26 }
   0x6   :  { %p486_p3 = por %p485_p2, %p484_p1 }
   0x8   :  { %p487_p4 = pnand %p486_p3, %p480_p0 }
   0xa   :  { %490 = shalt.err (!%p487_p4)
}
   0xb   :  { %s516_s27 = smov 64   ;;  %s517_s28 = smov 4  }
   0xc   :  { %27 = dma.hbm_to_vmem [thread:$0]  %s652_s1, 256, %s22_s25, [#allocation3], %s516_s27, %s516_s27, %s517_s28  }
   0xd   :  { %s518_s8 = smov [#allocation4]  }
   0xe   :  { %s42_s9 = sshll.u32 %s518_s8, 4  ;;  %s43_s9 = int_to_ptr.vmem [resolvable:$true] %s42_s9 }
   0xf   :  { %s499_s10 = scalar_lea.vmem %s43_s9, 16  ;;  %s503_s11 = scalar_lea.vmem %s43_s9, 32 }
  0x10   :  { %p500_p5 = scmp.ne.s32.totalorder %s43_s9, %s499_s10  ;;  %p504_p6 = scmp.lt.s32.totalorder %s43_s9, %s43_s9 }
  0x11   :  { %p505_p7 = scmp.lt.s32.totalorder %s503_s11, %s499_s10 }
  0x13   :  { %p506_p8 = por %p505_p7, %p504_p6 }
  0x15   :  { %p507_p9 = pnand %p506_p8, %p500_p5 }
  0x17   :  { %510 = shalt.err (!%p507_p9)
}
  0x18   :  { %45 = dma.hbm_to_vmem [thread:$0]  %s657_s6, 16, %s43_s9, [#allocation5]  }
  0x19   :  { %511 = dma.done.wait [#allocation3], 256  }
  0x1a   :  { %512 = vsyncadd [#allocation3], 4294967040 }
  0x1b   :  { %513 = dma.done.wait [#allocation5], 16  }
  0x1c   :  { %514 = vsyncadd [#allocation5], 4294967280  ;;  %v519_v0 = vmov 0.0   ;;  %vm520_vm0 = vmmov 0   ;;  %v453_v1 = vld [vmem:[#allocation2 + $0x8] sm:$0xff]   ;;  %v454_v2 = vld [vmem:[#allocation2] sm:$0xff]  }
  0x1d   :  { %399 = vmatprep.subr.bf16.mxu0 %v519_v0  ;;  %403 = vmatprep.mubr.msk.bf16.mxu0 %vm520_vm0, %v519_v0  ;;  %v53_v3 = vld [vmem:[%s651_s0] sm:$0xff]  ;;  %v455_v4 = vld [vmem:[%s654_s3 + $0x38] sm:$0xff]   ;;  %v456_v6 = vld [vmem:[%s654_s3 + $0x30] sm:$0xff]   ;;  %vm78_vm1 = vcmask 261120   ;;  %vm348_vm2 = vcmask 64512  }
  0x1e   :  { %407 = vmatprep.subr.bf16.mxu1 %v519_v0  ;;  %423 = vmatprep.mubr.msk.bf16.mxu1 %vm520_vm0, %v519_v0  ;;  %v54_v5 = vpack.c.bf16 %v53_v3, %v53_v3  ;;  %v457_v7 = vld [vmem:[%s654_s3 + $0x28] sm:$0xff]   ;;  %v458_v8 = vld [vmem:[%s654_s3 + $0x20] sm:$0xff]   ;;  %v459_v9 = vld [vmem:[%s654_s3 + $0x18] sm:$0xff]  }
  0x1f   :  { %400 = vmatpush3.bf16.msra.mxu0 %v453_v1  ;;  %408 = vmatpush3.bf16.msra.mxu1 %v455_v4  ;;  %v460_v10 = vld [vmem:[%s654_s3 + $0x10] sm:$0xff]   ;;  %v461_v11 = vld [vmem:[%s654_s3 + $0x8] sm:$0xff]   ;;  %v462_v12 = vld [vmem:[%s654_s3] sm:$0xff]  }
  0x20   :  { %401 = vmatprep.subr.bf16.mxu0 %v519_v0  ;;  %409 = vmatprep.subr.bf16.mxu1 %v519_v0  ;;  %v463_v13 = vld [vmem:[%s656_s5 + $0x38] sm:$0xff]   ;;  %v464_v14 = vld [vmem:[%s656_s5 + $0x30] sm:$0xff]   ;;  %v465_v15 = vld [vmem:[%s656_s5 + $0x28] sm:$0xff]  }
  0x21   :  { %v466_v16 = vld [vmem:[%s656_s5 + $0x20] sm:$0xff]   ;;  %v467_v17 = vld [vmem:[%s656_s5 + $0x18] sm:$0xff]   ;;  %v468_v18 = vld [vmem:[%s656_s5 + $0x10] sm:$0xff]  }
  0x22   :  { %v356_v19 = vld [vmem:[%s653_s2] ss:$0 sm:$0xff]  ;;  %v469_v27 = vld [vmem:[%s656_s5 + $0x8] sm:$0xff]   ;;  %v369_v37 = vld [vmem:[#allocation4] ss:$0 sm:$0xff] }
  0x23   :  { %402 = vmatpush3.bf16.msra.mxu0 %v454_v2  ;;  %410 = vmatpush3.bf16.msra.mxu1 %v456_v6  ;;  %v470_v28 = vld [vmem:[%s656_s5] sm:$0xff]  }
  0x24   :  { %427 = vmatprep.subr.bf16.mxu0 %v519_v0  ;;  %411 = vmatprep.subr.bf16.mxu1 %v519_v0  ;;  %v360_v29 = vld [vmem:[%s655_s4] ss:$0 sm:$0xff] }
  0x26   :  { %404 = vmatmul.mubr.msk.bf16.vlgmr.msra.gmra.mxu0 %vm78_vm1, %v54_v5 }
  0x27   :  { %443 = vmatprep.mubr.msk.bf16.mxu0 %vm520_vm0, %v519_v0  ;;  %412 = vmatpush3.bf16.msra.mxu1 %v457_v7 }
  0x28   :  { %413 = vmatprep.subr.bf16.mxu1 %v519_v0  ;;  %428 = vmatpush3.bf16.msra.mxu0 %v463_v13 }
  0x29   :  { %429 = vmatprep.subr.bf16.mxu0 %v519_v0 }
  0x2b   :  { %414 = vmatpush3.bf16.msra.mxu1 %v458_v8 }
  0x2c   :  { %415 = vmatprep.subr.bf16.mxu1 %v519_v0  ;;  %430 = vmatpush3.bf16.msra.mxu0 %v464_v14 }
  0x2d   :  { %431 = vmatprep.subr.bf16.mxu0 %v519_v0 }
  0x2f   :  { %416 = vmatpush3.bf16.msra.mxu1 %v459_v9 }
  0x30   :  { %417 = vmatprep.subr.bf16.mxu1 %v519_v0  ;;  %432 = vmatpush3.bf16.msra.mxu0 %v465_v15 }
  0x31   :  { %433 = vmatprep.subr.bf16.mxu0 %v519_v0 }
  0x33   :  { %418 = vmatpush3.bf16.msra.mxu1 %v460_v10 }
  0x34   :  { %419 = vmatprep.subr.bf16.mxu1 %v519_v0  ;;  %434 = vmatpush3.bf16.msra.mxu0 %v466_v16 }
  0x35   :  { %435 = vmatprep.subr.bf16.mxu0 %v519_v0 }
  0x37   :  { %420 = vmatpush3.bf16.msra.mxu1 %v461_v11 }
  0x38   :  { %421 = vmatprep.subr.bf16.mxu1 %v519_v0  ;;  %436 = vmatpush3.bf16.msra.mxu0 %v467_v17 }
  0x39   :  { %437 = vmatprep.subr.bf16.mxu0 %v519_v0 }
  0x3b   :  { %422 = vmatpush3.bf16.msra.mxu1 %v462_v12 }
  0x3c   :  { %438 = vmatpush3.bf16.msra.mxu0 %v468_v18 }
  0x3d   :  { %439 = vmatprep.subr.bf16.mxu0 %v519_v0 }
  0x40   :  { %440 = vmatpush3.bf16.msra.mxu0 %v469_v27 }
  0x41   :  { %441 = vmatprep.subr.bf16.mxu0 %v519_v0 }
  0x44   :  { %442 = vmatpush3.bf16.msra.mxu0 %v470_v28 }
  0xe6   :  { %v116_v20 = vpop.f32.mrf.mxu0 }
  0xe7   :  { %v117_v21 = vadd.f32 %v356_v19, %v116_v20 }
  0xe8   :  { %v405_v22 = vpop.f32.mrf.mxu0 }
  0xe9   :  { %v122_v23 = vmax.f32 %v117_v21, 0.0 }
  0xea   :  { %v119_v24 = vpop.f32.mrf.mxu0 }
  0xeb   :  { %v123_v25 = vpack.c.bf16 %v122_v23, %v122_v23 }
  0xec   :  { %v406_v26 = vpop.f32.mrf.mxu0 }
  0xed   :  { %424 = vmatmul.mubr.bf16.vlgmr.msra.gmra.mxu1 %v123_v25 }
 0x1ad   :  { %v229_v30 = vpop.f32.mrf.mxu1 }
 0x1ae   :  { %v230_v31 = vadd.f32 %v360_v29, %v229_v30 }
 0x1af   :  { %v425_v32 = vpop.f32.mrf.mxu1 }
 0x1b0   :  { %v235_v33 = vmax.f32 %v230_v31, 0.0 }
 0x1b1   :  { %v232_v34 = vpop.f32.mrf.mxu1 }
 0x1b2   :  { %v236_v35 = vpack.c.bf16 %v235_v33, %v235_v33 }
 0x1b3   :  { %v426_v36 = vpop.f32.mrf.mxu1 }
 0x1b4   :  { %444 = vmatmul.mubr.bf16.vlgmr.msra.gmra.mxu0 %v236_v35 }
 0x274   :  { %v342_v38 = vpop.f32.mrf.mxu0 }
 0x275   :  { %v343_v39 = vadd.f32 %v369_v37, %v342_v38 }
 0x276   :  { %v445_v40 = vpop.f32.mrf.mxu0 }
 0x277   :  { %349 = vst.msk [vmem:[%s658_s7] sm:$0xff] %vm348_vm2, %v343_v39 }
 0x278   :  { %v345_v41 = vpop.f32.mrf.mxu0 }
 0x27a   :  { %v446_v42 = vpop.f32.mrf.mxu0 }
 0x27b   :  { %354 = vsyncpa [#allocation3], 1 }
 0x27c   :  { %355 = vsyncpa [#allocation5], 1 }

</bundles_post_ra>
